<compile_context>
chip_gen: v7x
topology: tpu7x:2x2x1
jax: 0.10.0
libtpu: 0.0.40
codegen_flags: <defaults>
</compile_context>

<pallas_src>
import functools
import math

import jax
import jax.numpy as jnp
import numpy as np
from jax import lax
from jax.experimental import pallas as pl
from jax.experimental.pallas import tpu as pltpu


# ---------------------------------------------------------------------------
# Helpers
# ---------------------------------------------------------------------------

def _row_block(n_rows, row_bytes, n_live, budget_bytes):
    """Rows per block: the full array if it fits, else a multiple of 8 sized so
    that ~n_live live row-blocks (double-buffered I/O plus f32 temporaries)
    stay inside a budget that fits even v5e's 16 MiB default scoped VMEM."""
    max_rows = max(1, budget_bytes // max(1, n_live * row_bytes))
    if n_rows <= max_rows:
        return n_rows                       # full leading dim (rule-exempt)
    return max(8, (max_rows // 8) * 8)      # multiple of 8 sublanes


# ---------------------------------------------------------------------------
# Documented "last observed risk" contract.
# ---------------------------------------------------------------------------

def _ffill_kernel(obs_ref, x_ref, o_ref, *, D):
    """Blocks: obs (bb, T) exact 0/1 f32, x/o (bb, T*D) with lane l = t*D + d.

    Each row is a full [T, D] series laid out lane-dense; the forward fill is
    a ceil(log2(T))-round Hillis-Steele scan of static lane shifts (stride D)
    plus VPU selects.  No transposes, no gathers, no index arithmetic on data.
    """
    bb, TD = x_ref.shape
    T = obs_ref.shape[1]

    x = x_ref[...].astype(jnp.float32)            # upcast once (bf16-safe)
    obs = obs_ref[...]                            # exact 0.0 / 1.0

    lane = lax.broadcasted_iota(jnp.int32, (bb, TD), 1)
    not_first = lane >= D                         # lanes of time steps t >= 1

    # obs[b, t-1] spread onto the D lanes of time step t via a tiny constant
    # selection matmul (each output lane receives exactly one 0/1 term, so the
    # result is exact).  This is the in-kernel broadcast across the risk dim.
    lane_e = lax.broadcasted_iota(jnp.int32, (T, TD), 1)
    trow = lax.broadcasted_iota(jnp.int32, (T, TD), 0)
    sel_prev = ((lane_e >= (trow + 1) * D) &
                (lane_e < (trow + 2) * D)).astype(jnp.float32)
    obs_prev = jnp.dot(obs, sel_prev, preferred_element_type=jnp.float32)

    # t == 0 always "has" a value: the reference's default gather index 0.
    have = jnp.where(not_first, obs_prev, 1.0)            # (bb, TD) 0/1 f32
    val = jnp.where(not_first, jnp.roll(x, D, axis=1), x)

    # Hillis-Steele forward fill over time (lane stride D).  Invariant: before
    # the round with shift k, every lane with t < k already has have == 1
    # (cumulative reach of earlier rounds is k-1, plus the always-set t == 0
    # default), so the values wrapped around by jnp.roll are never selected
    # and no extra `t >= k` mask is needed.
    k = 1
    while k < T:
        val_k = jnp.roll(val, k * D, axis=1)
        have_k = jnp.roll(have, k * D, axis=1)
        keep = have > 0.5
        val = jnp.where(keep, val, val_k)
        have = jnp.maximum(have, have_k)
        k *= 2

    o_ref[...] = val.astype(o_ref.dtype)


def last_observed_risk(x, observed, *, row_block=None,
                       vmem_budget_bytes=6 * 1024 * 1024):
    """x: [B, T, D] float, observed: [B, T] 0/1.  Returns (z, None) with
    z[b, t] = x[b, most recent observed step strictly before t (else 0)].

    Layout is reshape-only (no XLA transposes): rows = batch, lanes = T*D.
    """
    B, T, D = x.shape
    TD = T * D
    x2 = x.reshape(B, TD)                       # free: collapses minor dims
    obs2 = observed.astype(jnp.float32)         # tiny [B, T] side input

    if row_block is None:
        # ~12 live row-blocks: double-buffered x/z I/O plus f32 temporaries
        # (x, val, have, val_k, have_k, obs_prev, iotas, ...).
        row_block = _row_block(B, TD * 4, 12, vmem_budget_bytes)
    grid = (pl.cdiv(B, row_block),)

    log_t = max(1, math.ceil(math.log2(max(T, 2))))
    cost = pl.CostEstimate(
        flops=int(B * TD * (5 * log_t + 6) + 2 * B * T * TD),
        transcendentals=0,
        bytes_accessed=int(2 * B * TD * x.dtype.itemsize + 4 * B * T),
    )

    z2 = pl.pallas_call(
        functools.partial(_ffill_kernel, D=D),
        out_shape=jax.ShapeDtypeStruct((B, TD), x.dtype),
        grid=grid,
        in_specs=[
            pl.BlockSpec((row_block, T), lambda i: (i, 0)),    # observed
            pl.BlockSpec((row_block, TD), lambda i: (i, 0)),   # x
        ],
        out_specs=pl.BlockSpec((row_block, TD), lambda i: (i, 0)),
        compiler_params=pltpu.CompilerParams(
            dimension_semantics=("parallel",)),
        cost_estimate=cost,
    )(obs2, x2)

    return z2.reshape(B, T, D), None


# ---------------------------------------------------------------------------
# Literal Random.forward: z = sigmoid(randn_like(x)), aux = None.
# ---------------------------------------------------------------------------

def _sigmoid_kernel(e_ref, o_ref):
    e = jnp.exp(-e_ref[...].astype(jnp.float32))
    # TODO(synk): pl.reciprocal(..., approx=True) would push the divide to the
    # EUP on real hardware, but the plain f32 divide keeps the kernel portable.
    o_ref[...] = (1.0 / (1.0 + e)).astype(o_ref.dtype)


def random_forward(x, key, *, row_block=None,
                   vmem_budget_bytes=8 * 1024 * 1024):
    """Literal Random.forward: (sigmoid of i.i.d. standard-normal noise, None).

    The noise is exact N(0,1) from jax.random.normal; the Pallas kernel fuses
    the sigmoid over a lane-dense [B, T*D] view, output emitted directly in the
    [B, T, D] memory order (reshape-only, no transposes).
    # TODO(synk): on-chip pltpu.prng_seed/prng_random_bits would avoid the HBM
    # pass for the noise but have no interpret/CPU lowering, so the noise is
    # generated outside the kernel.
    """
    B, T, D = x.shape
    TD = T * D
    eps = jax.random.normal(key, (B, TD), dtype=jnp.float32)

    if row_block is None:
        row_block = _row_block(B, TD * 4, 6, vmem_budget_bytes)
    grid = (pl.cdiv(B, row_block),)

    cost = pl.CostEstimate(
        flops=int(4 * B * TD),
        transcendentals=int(B * TD),
        bytes_accessed=int(B * TD * (4 + x.dtype.itemsize)),
    )

    z2 = pl.pallas_call(
        _sigmoid_kernel,
        out_shape=jax.ShapeDtypeStruct((B, TD), x.dtype),
        grid=grid,
        in_specs=[pl.BlockSpec((row_block, TD), lambda i: (i, 0))],
        out_specs=pl.BlockSpec((row_block, TD), lambda i: (i, 0)),
        compiler_params=pltpu.CompilerParams(
            dimension_semantics=("parallel",)),
        cost_estimate=cost,
    )(eps)

    return z2.reshape(B, T, D), None


# ---------------------------------------------------------------------------
# Reference + test
# ---------------------------------------------------------------------------

def ref_last_observed(x, obs):
    """NumPy reference for the documented last-observed-risk gather."""
    B, T, D = x.shape
    idx = np.zeros((B, T), dtype=np.int64)
    for b in range(B):
        for t in range(T):
            v = 0
            for s in range(t):
                v = max(v, int(obs[b, s]) * s)
            idx[b, t] = v
    return np.take_along_axis(x, idx[:, :, None], axis=1)


if __name__ == "__main__":
    key = jax.random.PRNGKey(0)
    B, T, D = 2, 8, 4            # batch, max_steps, risk_dimension

    kx, ko, kz, key = jax.random.split(key, 4)
    observed = jax.random.bernoulli(ko, p=0.5, shape=(B, T)).astype(jnp.float32)
    x = jax.random.normal(kx, (B, T, D), dtype=jnp.float32)
    x = x * observed[:, :, None]              # "0s for unobserved" (docstring)

    # 1) Literal Random.forward: sigmoid of standard-normal noise, like x.
    z_rand, aux = random_forward(x, kz)
    z_rand = jax.block_until_ready(z_rand)
    assert aux is None
    assert z_rand.shape == x.shape
    zr = np.asarray(z_rand)
    assert np.all(np.isfinite(zr)) and np.all(zr > 0.0) and np.all(zr < 1.0)
    eps_ref = np.asarray(jax.random.normal(kz, (B, T * D), dtype=jnp.float32))
    np.testing.assert_allclose(
        zr.reshape(B, T * D), 1.0 / (1.0 + np.exp(-eps_ref)),
        rtol=1e-5, atol=1e-6)

    # 2) Documented last-observed-risk contract.
    z, aux = last_observed_risk(x, observed)
    z = jax.block_until_ready(z)
    assert aux is None
    np.testing.assert_allclose(
        np.asarray(z), ref_last_observed(np.asarray(x), np.asarray(observed)),
        rtol=1e-6, atol=1e-6)

    # Larger batch: exercises the multi-block row grid (row_block=16 -> 4
    # steps) and shows the kernel does not rely on unobserved rows being zero.
    B2, T2, D2 = 64, 8, 4
    kx2, ko2 = jax.random.split(key)
    observed2 = jax.random.bernoulli(ko2, p=0.5, shape=(B2, T2)).astype(jnp.float32)
    x2 = jax.random.normal(kx2, (B2, T2, D2), dtype=jnp.float32)
    z2, _ = last_observed_risk(x2, observed2, row_block=16)
    z2 = jax.block_until_ready(z2)
    np.testing.assert_allclose(
        np.asarray(z2), ref_last_observed(np.asarray(x2), np.asarray(observed2)),
        rtol=1e-6, atol=1e-6)

    # random_forward with a blocked grid as well.
    z3, _ = random_forward(x2, kz, row_block=16)
    z3 = jax.block_until_ready(z3)
    z3n = np.asarray(z3)
    assert z3.shape == x2.shape and np.all(z3n > 0.0) and np.all(z3n < 1.0)

    print("KERNEL_OK")
</pallas_src>

<mosaic_0001>
module attributes {stable_mosaic.version = 11 : i64} {
  func.func @_sigmoid_kernel(%arg0: i32, %arg1: memref<2x32xf32, #tpu.memory_space<vmem>>, %arg2: memref<2x32xf32, #tpu.memory_space<vmem>>) attributes {dimension_semantics = [#tpu.dimension_semantics<parallel>], iteration_bounds = array<i64: 1>, scalar_prefetch = 0 : i64, scratch_operands = 0 : i64, tpu.core_type = #tpu.core_type<tc>, window_params = [{transform_indices = @transform_0, window_bounds = array<i64: 2, 32>}, {transform_indices = @transform_1, window_bounds = array<i64: 2, 32>}]} {
    %c0 = arith.constant 0 : index
    %c0_0 = arith.constant 0 : index
    %0 = vector.load %arg1[%c0, %c0_0] : memref<2x32xf32, #tpu.memory_space<vmem>>, vector<2x32xf32>
    %cst = arith.constant 0.000000e+00 : f32
    %1 = vector.broadcast %cst : f32 to vector<2x32xf32>
    %2 = arith.subf %1, %0 : vector<2x32xf32>
    %3 = math.exp %2 : vector<2x32xf32>
    %cst_1 = arith.constant 1.000000e+00 : f32
    %4 = vector.broadcast %cst_1 : f32 to vector<2x32xf32>
    %5 = arith.addf %4, %3 : vector<2x32xf32>
    %cst_2 = arith.constant 1.000000e+00 : f32
    %6 = vector.broadcast %cst_2 : f32 to vector<2x32xf32>
    %7 = arith.divf %6, %5 : vector<2x32xf32>
    %c0_3 = arith.constant 0 : index
    %c0_4 = arith.constant 0 : index
    %8 = vector.load %arg2[%c0_3, %c0_4] : memref<2x32xf32, #tpu.memory_space<vmem>>, vector<2x32xf32>
    tpu.vector_store %arg2[%c0_3, %c0_4], %7 {strides = array<i32>} : memref<2x32xf32, #tpu.memory_space<vmem>>, vector<2x32xf32>,
    return
  }
  func.func @transform_0(%arg0: i32) -> (i32, i32) {
    %c0_i32 = arith.constant 0 : i32
    %c0_i32_0 = arith.constant 0 : i32
    return %arg0, %c0_i32 : i32, i32
  }
  func.func @transform_1(%arg0: i32) -> (i32, i32) {
    %c0_i32 = arith.constant 0 : i32
    %c0_i32_0 = arith.constant 0 : i32
    return %arg0, %c0_i32 : i32, i32
  }
}

</mosaic_0001>

<bundles_post_ra>
// kernel: tpu_custom_call.1
= control target key start
LH: loop header
LB: loop body
LE: loop exit
PB: predicated region body
PF: predicated region fallthrough
CT: control target
= control target key end

     0   :  { %6 = vsyncpa [#allocation3], 0  ;;  %s135_s0 = inlined_call_operand.hbm [shape: f32[2,32], index: 0, kind: input, shape index: {}]   ;;  %s136_s1 = inlined_call_operand.hbm [shape: f32[2,32], index: 1, kind: output, shape index: {}]  }
   0x1   :  { %7 = vsyncpa [#allocation4], 0  ;;  %s99_s6 = smov [#allocation2]   ;;  %s51_s10 = scalar_lea.hbm %s135_s0, 32 }
   0x2   :  { %s14_s7 = sshll.u32 %s99_s6, 4  ;;  %p52_p0 = scmp.ne.s32.totalorder %s135_s0, %s51_s10  ;;  %s15_s7 = int_to_ptr.vmem [resolvable:$true] %s14_s7 }
   0x3   :  { %p55_p1 = scmp.lt.u32.totalorder %s51_s10, %s135_s0 }
   0x5   :  { %p57_p2 = pnand %p55_p1, %p52_p0 }
   0x7   :  { %60 = shalt.err (!%p57_p2)
}
   0x8   :  { %s61_s15 = scalar_lea.vmem %s15_s7, 32  ;;  %p66_p4 = scmp.lt.s32.totalorder %s15_s7, %s15_s7 }
   0x9   :  { %p62_p3 = scmp.ne.s32.totalorder %s15_s7, %s61_s15  ;;  %p67_p5 = scmp.lt.s32.totalorder %s61_s15, %s61_s15 }
   0xb   :  { %p68_p6 = por %p67_p5, %p66_p4 }
   0xd   :  { %p69_p7 = pnand %p68_p6, %p62_p3 }
   0xf   :  { %72 = shalt.err (!%p69_p7)
}
  0x10   :  { %17 = dma.hbm_to_vmem [thread:$0]  %s135_s0, 32, %s15_s7, [#allocation3]  }
  0x11   :  { %95 = dma.done.wait [#allocation3], 32  }
  0x12   :  { %96 = vsyncadd [#allocation3], 4294967264  ;;  %v21_v0 = vld [vmem:[#allocation2] sm:$0x3]  ;;  %s100_s18 = smov [#allocation5]   ;;  %vm28_vm0 = vcmask 254976  }
  0x13   :  { %v22_v1 = vsub.f32 0.0, %v21_v0  ;;  %s36_s19 = sshll.u32 %s100_s18, 4  ;;  %s37_s19 = int_to_ptr.vmem [resolvable:$true] %s36_s19 }
  0x14   :  { %s73_s20 = scalar_lea.vmem %s37_s19, 32  ;;  %p78_p9 = scmp.lt.s32.totalorder %s37_s19, %s37_s19 }
  0x15   :  { %v23_v2 = vmul.f32 1.442695, %v22_v1  ;;  %p74_p8 = scmp.ne.s32.totalorder %s37_s19, %s73_s20  ;;  %p79_p10 = scmp.lt.s32.totalorder %s73_s20, %s73_s20 }
  0x17   :  { %47 = vpow2.f32 %v23_v2  ;;  %p80_p11 = por %p79_p10, %p78_p9 }
  0x19   :  { %p81_p12 = pnand %p80_p11, %p74_p8 }
  0x21   :  { %v48_v3 = vpop.eup %47 }
  0x22   :  { %v25_v4 = vadd.f32 1.0, %v48_v3 }
  0x24   :  { %49 = vrcp.f32 %v25_v4 }
  0x2e   :  { %v50_v5 = vpop.eup %49 }
  0x2f   :  { %29 = vst.msk [vmem:[#allocation5] sm:$0x3] %vm28_vm0, %v50_v5 }
  0x30   :  { %84 = shalt.err (!%p81_p12)
}
  0x31   :  { %s85_s22 = scalar_lea.hbm %s136_s1, 32 }
  0x32   :  { %p86_p13 = scmp.ne.s32.totalorder %s136_s1, %s85_s22  ;;  %p89_p0 = scmp.lt.u32.totalorder %s85_s22, %s136_s1 }
  0x34   :  { %p91_p1 = pnand %p89_p0, %p86_p13 }
  0x36   :  { %94 = shalt.err (!%p91_p1)
}
  0x37   :  { %39 = dma.vmem_to_hbm [thread:$0]  %s37_s19, 32, %s136_s1, [#allocation4]  }
  0x38   :  { %97 = dma.done.wait [#allocation4], 32  }
  0x39   :  { %98 = vsyncadd [#allocation4], 4294967264 }
  0x3a   :  { %43 = vsyncpa [#allocation3], 1 }
  0x3b   :  { %44 = vsyncpa [#allocation4], 1 }

</bundles_post_ra>
